<compile_context>
chip_gen: v7x
topology: tpu7x:2x2x1
jax: 0.10.0
libtpu: 0.0.40
codegen_flags: <defaults>
</compile_context>

<pallas_src>
from functools import partial

import numpy as np
import jax
import jax.numpy as jnp
from jax.experimental import pallas as pl
from jax.experimental.pallas import tpu as pltpu


def _trunc_div(a, b):
    # C/C++ integer division truncates toward zero (NOT floor division).
    a = np.asarray(a)
    q = np.abs(a) // b
    return np.where(a < 0, -q, q)


def _round_up(a, b):
    return ((a + b - 1) // b) * b


def _out_size(i, k, s, p, op, d):
    return (i - 1) * s - 2 * p + d * (k - 1) + op + 1


def _fold_weight_groups(weight, groups):
    """(C_in, C_out//g, KH, KW) -> block-diagonal (KH, KW, C_out, C_in)."""
    C_in, Cout_g, KH, KW = weight.shape
    Cin_g = C_in // groups
    C_out = Cout_g * groups
    w_t = jnp.transpose(weight, (2, 3, 1, 0))            # (KH, KW, Cout_g, C_in)
    if groups == 1:
        return w_t
    # TODO(synk): for large `groups` (depthwise-like) a group grid axis would be
    # better than this block-diagonal weight (which multiplies FLOPs by groups).
    w_full = jnp.zeros((KH, KW, C_out, C_in), weight.dtype)
    for g in range(groups):
        w_full = w_full.at[:, :, g * Cout_g:(g + 1) * Cout_g,
                           g * Cin_g:(g + 1) * Cin_g].set(
            w_t[:, :, :, g * Cin_g:(g + 1) * Cin_g])
    return w_full


# --------------------------------------------------------------------------
# Fast path: stride == (1, 1).  No im2col buffer: per (h_out, kh) grid step the
# BlockSpec index_map picks one spatially-padded input row with an affine shift.
# --------------------------------------------------------------------------
def _convt_stride1_pallas(x, weight, H_out, W_out, padding, dilation, groups,
                          compute_dtype):
    N, C_in, H_in, W_in = x.shape
    _, Cout_g, KH, KW = weight.shape
    C_out = Cout_g * groups
    ph, pw = padding
    dh, dw = dilation

    # Zero padding so every kernel tap becomes a static shift into the padded
    # array; the zeros implement the 0<=h_in<H_in / 0<=w_in<W_in bounds check.
    B_h = max(0, (KH - 1) * dh - ph)
    B_w = max(0, (KW - 1) * dw - pw)
    H_pad = max(H_out + ph, H_in) + B_h
    W_pad = max(W_out + pw, W_in) + B_w
    row_off = ph + B_h                                      # row = ho + row_off - kh*dh
    col_shift = [pw + B_w - kw * dw for kw in range(KW)]    # static, >= 0

    # (N, C_in, H_in, W_in) -> (H_pad, N, C_in, W_pad) bf16.  Leading H axis lets
    # the BlockSpec select one padded row per grid step (block size 1 there).
    x_t = jnp.transpose(x, (2, 0, 1, 3)).astype(compute_dtype)
    x_p = jnp.pad(x_t, ((B_h, H_pad - B_h - H_in), (0, 0), (0, 0),
                        (B_w, W_pad - B_w - W_in)))

    w_full = _fold_weight_groups(weight, groups).astype(compute_dtype)  # (KH,KW,C_out,C_in)

    def kernel(x_ref, w_ref, o_ref):
        kh = pl.program_id(1)

        @pl.when(kh == 0)
        def _init():
            o_ref[...] = jnp.zeros_like(o_ref)

        w_kh = w_ref[kh]                      # (KW, C_out, C_in), VMEM-resident weight
        zero_acc = jnp.zeros((C_out, W_out), jnp.float32)
        for n in range(N):
            acc = zero_acc
            for kw in range(KW):
                s = col_shift[kw]
                xs = x_ref[0, n, :, s:s + W_out]          # (C_in, W_out) static slice
                acc = acc + jnp.dot(w_kh[kw], xs,
                                    preferred_element_type=jnp.float32)
            o_ref[0, n] += acc

    flops = 2 * N * H_out * W_out * KH * KW * (C_in // groups) * C_out
    bytes_accessed = (KH * x_p.size * x_p.dtype.itemsize
                      + w_full.size * w_full.dtype.itemsize
                      + N * H_out * W_out * C_out * 4)

    out = pl.pallas_call(
        kernel,
        out_shape=jax.ShapeDtypeStruct((H_out, N, C_out, W_out), jnp.float32),
        grid=(H_out, KH),
        in_specs=[
            # one padded input row per (h_out, kh); affine shift in the index_map
            pl.BlockSpec((1, N, C_in, W_pad),
                         lambda ho, kh: (ho + row_off - kh * dh, 0, 0, 0)),
            # full folded weight, resident across the whole grid (constant block)
            pl.BlockSpec((KH, KW, C_out, C_in), lambda ho, kh: (0, 0, 0, 0)),
        ],
        out_specs=pl.BlockSpec((1, N, C_out, W_out),
                               lambda ho, kh: (ho, 0, 0, 0)),
        compiler_params=pltpu.CompilerParams(
            dimension_semantics=("parallel", "arbitrary")),
        cost_estimate=pl.CostEstimate(flops=flops, transcendentals=0,
                                      bytes_accessed=bytes_accessed),
    )(x_p, w_full)

    # (H_out, N, C_out, W_out) -> (N, C_out, H_out, W_out); minor axis preserved.
    return jnp.transpose(out, (1, 2, 0, 3))


# --------------------------------------------------------------------------
# Fallback: stride > 1 (trunc-div index mapping is not an affine shift).
# Gather-based folded matmul; gather stays in XLA (no in-kernel dynamic gather).
# --------------------------------------------------------------------------
def _convt_general_pallas(x, weight, H_out, W_out, stride, padding, dilation,
                          groups, compute_dtype, tm=256):
    N, C_in, H_in, W_in = x.shape
    _, Cout_g, KH, KW = weight.shape
    C_out = Cout_g * groups
    sh, sw = stride
    ph, pw = padding
    dh, dw = dilation
    K = KH * KW
    KC = K * C_in
    M = N * H_out * W_out

    # trace-time index table reproducing the CUDA trunc-div indexing
    h_num = np.arange(H_out)[:, None] + ph - np.arange(KH)[None, :] * dh
    w_num = np.arange(W_out)[:, None] + pw - np.arange(KW)[None, :] * dw
    h_in = _trunc_div(h_num, sh)
    w_in = _trunc_div(w_num, sw)
    h_ok = (h_in >= 0) & (h_in < H_in)
    w_ok = (w_in >= 0) & (w_in < W_in)
    h_idx = np.clip(h_in, 0, H_in - 1)
    w_idx = np.clip(w_in, 0, W_in - 1)
    flat = h_idx[:, None, :, None] * W_in + w_idx[None, :, None, :]
    valid = h_ok[:, None, :, None] & w_ok[None, :, None, :]
    flat = np.where(valid, flat, H_in * W_in).astype(np.int32)       # OOB -> zero row
    flat = flat.reshape(H_out, W_out, K)

    x_flat = jnp.transpose(x, (0, 2, 3, 1)).reshape(N, H_in * W_in, C_in)
    x_flat = jnp.concatenate(
        [x_flat, jnp.zeros((N, 1, C_in), x.dtype)], axis=1).astype(compute_dtype)
    G = jnp.take(x_flat, jnp.asarray(flat), axis=1).reshape(M, KC)

    w_full = _fold_weight_groups(weight, groups)                      # (KH,KW,C_out,C_in)
    w_mat = jnp.transpose(w_full, (0, 1, 3, 2)).reshape(KC, C_out).astype(compute_dtype)

    # >= 2 row blocks when possible (v7x megacore), rows a multiple of 8.
    tm_eff = max(8, _round_up(min(tm, -(-M // 2)), 8))
    grid_m = pl.cdiv(M, tm_eff)     # partial last block is masked by Pallas

    def kernel(g_ref, w_ref, o_ref):
        o_ref[...] = jnp.dot(g_ref[...], w_ref[...],
                             preferred_element_type=jnp.float32)

    flops = 2 * M * KC * C_out
    bytes_accessed = (G.size * G.dtype.itemsize
                      + w_mat.size * w_mat.dtype.itemsize + M * C_out * 4)

    out = pl.pallas_call(
        kernel,
        out_shape=jax.ShapeDtypeStruct((M, C_out), jnp.float32),
        grid=(grid_m,),
        in_specs=[
            pl.BlockSpec((tm_eff, KC), lambda i: (i, 0)),
            pl.BlockSpec((KC, C_out), lambda i: (0, 0)),      # resident weight
        ],
        out_specs=pl.BlockSpec((tm_eff, C_out), lambda i: (i, 0)),
        compiler_params=pltpu.CompilerParams(
            dimension_semantics=("parallel",)),
        cost_estimate=pl.CostEstimate(flops=flops, transcendentals=0,
                                      bytes_accessed=bytes_accessed),
    )(G, w_mat)

    out = out.reshape(N, H_out, W_out, C_out)
    return jnp.transpose(out, (0, 3, 1, 2))                           # NCHW


@partial(jax.jit, static_argnames=("stride", "padding", "output_padding",
                                   "dilation", "groups", "compute_dtype"))
def conv_transpose2d_pallas(x, weight, stride=(1, 1), padding=(0, 0),
                            output_padding=(0, 0), dilation=(1, 1), groups=1,
                            compute_dtype=jnp.bfloat16):
    """x: (N, C_in, H_in, W_in) f32; weight: (C_in, C_out//groups, KH, KW) f32."""
    N, C_in, H_in, W_in = x.shape
    C_in_w, Cout_g, KH, KW = weight.shape
    assert C_in_w == C_in and C_in % groups == 0
    sh, sw = stride
    H_out = _out_size(H_in, KH, sh, padding[0], output_padding[0], dilation[0])
    W_out = _out_size(W_in, KW, sw, padding[1], output_padding[1], dilation[1])
    if sh == 1 and sw == 1:
        return _convt_stride1_pallas(x, weight, H_out, W_out, padding,
                                     dilation, groups, compute_dtype)
    # TODO(synk): for stride>1 the trunc-div row/col mapping is not affine; keep
    # the XLA-gathered im2col fallback (could move in-kernel with scalar-prefetch
    # row tables + per-row DMA if this case ever becomes hot).
    return _convt_general_pallas(x, weight, H_out, W_out, stride, padding,
                                 dilation, groups, compute_dtype)


def init_weight(key, in_channels, out_channels, kernel_size, groups=1, a=2.236):
    # kaiming_uniform_ (leaky_relu gain), deterministic via PRNGKey.
    kh, kw = kernel_size
    shape = (in_channels, out_channels // groups, kh, kw)
    fan_in = shape[1] * kh * kw
    gain = np.sqrt(2.0 / (1.0 + a * a))
    bound = gain * np.sqrt(3.0 / fan_in)
    return jax.random.uniform(key, shape, jnp.float32, -bound, bound)


def _reference_numpy(x, w, stride, padding, output_padding, dilation, groups):
    # Direct (slow) re-implementation of the CUDA kernel's loops.
    x = np.asarray(x)
    w = np.asarray(w)
    N, C_in, H_in, W_in = x.shape
    _, Cout_g, KH, KW = w.shape
    C_out = Cout_g * groups
    Cin_g = C_in // groups
    sh, sw = stride
    ph, pw = padding
    oph, opw = output_padding
    dh, dw = dilation
    H_out = _out_size(H_in, KH, sh, ph, oph, dh)
    W_out = _out_size(W_in, KW, sw, pw, opw, dw)
    out = np.zeros((N, C_out, H_out, W_out), dtype=np.float32)
    for n in range(N):
        for oc in range(C_out):
            grp = oc // Cout_g
            ocg = oc % Cout_g
            for ho in range(H_out):
                for wo in range(W_out):
                    s = 0.0
                    for kh in range(KH):
                        for kw in range(KW):
                            hi = int(_trunc_div(ho + ph - kh * dh, sh))
                            wi = int(_trunc_div(wo + pw - kw * dw, sw))
                            if 0 <= hi < H_in and 0 <= wi < W_in:
                                xv = x[n, grp * Cin_g:(grp + 1) * Cin_g, hi, wi]
                                wv = w[grp * Cin_g:(grp + 1) * Cin_g, ocg, kh, kw]
                                s += float(np.dot(xv, wv))
                    out[n, oc, ho, wo] = s
    return out


if __name__ == "__main__":
    key = jax.random.PRNGKey(0)
    k1, k2, k3, k4, k5, k6 = jax.random.split(key, 6)
    TOL = dict(rtol=5e-2, atol=5e-2)   # bf16 operands, f32 accumulation

    # Config 1: the problem's setting — asymmetric input & kernel, stride 1.
    x1 = jax.random.normal(k1, (2, 4, 8, 12), jnp.float32)
    w1 = init_weight(k2, 4, 8, (3, 5), groups=1)
    y1 = jax.block_until_ready(conv_transpose2d_pallas(x1, w1))
    r1 = _reference_numpy(x1, w1, (1, 1), (0, 0), (0, 0), (1, 1), 1)
    np.testing.assert_allclose(np.asarray(y1), r1, **TOL)

    # Config 2: stride / padding / output_padding / groups -> fallback path.
    x2 = jax.random.normal(k3, (2, 4, 6, 5), jnp.float32)
    w2 = init_weight(k4, 4, 8, (3, 3), groups=2)
    y2 = jax.block_until_ready(conv_transpose2d_pallas(
        x2, w2, stride=(2, 2), padding=(1, 1), output_padding=(1, 0),
        dilation=(1, 1), groups=2))
    r2 = _reference_numpy(x2, w2, (2, 2), (1, 1), (1, 0), (1, 1), 2)
    np.testing.assert_allclose(np.asarray(y2), r2, **TOL)

    # Config 3: stride 1 with padding / dilation / groups -> fast path generality.
    x3 = jax.random.normal(k5, (2, 4, 6, 7), jnp.float32)
    w3 = init_weight(k6, 4, 6, (3, 3), groups=2)
    y3 = jax.block_until_ready(conv_transpose2d_pallas(
        x3, w3, stride=(1, 1), padding=(2, 1), output_padding=(0, 0),
        dilation=(2, 2), groups=2))
    r3 = _reference_numpy(x3, w3, (1, 1), (2, 1), (0, 0), (2, 2), 2)
    np.testing.assert_allclose(np.asarray(y3), r3, **TOL)

    print("KERNEL_OK")
</pallas_src>

<mosaic_0001>
module attributes {stable_mosaic.version = 11 : i64} {
  func.func @kernel(%arg0: i32, %arg1: i32, %arg2: memref<1x2x4x20xbf16, #tpu.memory_space<vmem>>, %arg3: memref<3x5x8x4xbf16, #tpu.memory_space<vmem>>, %arg4: memref<1x2x8x16xf32, #tpu.memory_space<vmem>>) attributes {dimension_semantics = [#tpu.dimension_semantics<parallel>, #tpu.dimension_semantics<arbitrary>], iteration_bounds = array<i64: 10, 3>, scalar_prefetch = 0 : i64, scratch_operands = 0 : i64, tpu.core_type = #tpu.core_type<tc>, window_params = [{transform_indices = @transform_0, window_bounds = array<i64: 1, 2, 4, 20>}, {pipeline_mode = #tpu.pipeline_mode<synchronous>, transform_indices = @transform_1, window_bounds = array<i64: 3, 5, 8, 4>}, {transform_indices = @transform_2, window_bounds = array<i64: 1, 2, 8, 16>}]} {
    %c0_i32 = arith.constant 0 : i32
    %0 = arith.cmpi eq, %arg1, %c0_i32 : i32
    %1 = arith.extui %0 : i1 to i32
    %c0_i32_0 = arith.constant 0 : i32
    %2 = arith.cmpi ne, %1, %c0_i32_0 : i32
    scf.if %2 {
      %cst_65 = arith.constant 0.000000e+00 : f32
      %79 = vector.broadcast %cst_65 : f32 to vector<1x2x8x16xf32>
      %c0_66 = arith.constant 0 : index
      %c0_67 = arith.constant 0 : index
      %c0_68 = arith.constant 0 : index
      %c0_69 = arith.constant 0 : index
      %80 = vector.load %arg4[%c0_66, %c0_67, %c0_68, %c0_69] : memref<1x2x8x16xf32, #tpu.memory_space<vmem>>, vector<1x2x8x16xf32>
      tpu.vector_store %arg4[%c0_66, %c0_67, %c0_68, %c0_69], %79 {strides = array<i32>} : memref<1x2x8x16xf32, #tpu.memory_space<vmem>>, vector<1x2x8x16xf32>,
    } else {
    }
    %3 = arith.index_cast %arg1 : i32 to index
    %c0 = arith.constant 0 : index
    %c0_1 = arith.constant 0 : index
    %c0_2 = arith.constant 0 : index
    %4 = vector.load %arg3[%3, %c0, %c0_1, %c0_2] : memref<3x5x8x4xbf16, #tpu.memory_space<vmem>>, vector<1x5x8x4xbf16>
    %5 = vector.shape_cast %4 : vector<1x5x8x4xbf16> to vector<5x8x4xbf16>
    %cst = arith.constant 0.000000e+00 : f32
    %6 = vector.broadcast %cst : f32 to vector<8x16xf32>
    %c0_3 = arith.constant 0 : index
    %c0_4 = arith.constant 0 : index
    %c0_5 = arith.constant 0 : index
    %c4 = arith.constant 4 : index
    %7 = vector.load %arg2[%c0_3, %c0_4, %c0_5, %c4] : memref<1x2x4x20xbf16, #tpu.memory_space<vmem>>, vector<1x1x4x16xbf16>
    %8 = vector.shape_cast %7 : vector<1x1x4x16xbf16> to vector<4x16xbf16>
    %9 = vector.extract_strided_slice %5 {offsets = [0, 0, 0], sizes = [1, 8, 4], strides = [1, 1, 1]} : vector<5x8x4xbf16> to vector<1x8x4xbf16>
    %10 = vector.shape_cast %9 : vector<1x8x4xbf16> to vector<8x4xbf16>
    %cst_6 = arith.constant dense<0.000000e+00> : vector<8x16xf32>
    %11 = tpu.matmul %10, %8, %cst_6 {dimension_numbers = #tpu.dot_dimension_numbers<[1], [0], [0], [1], [0, 0, 1, 1], [], []>} : vector<8x4xbf16>, vector<4x16xbf16>, vector<8x16xf32> -> vector<8x16xf32>
    %12 = arith.addf %6, %11 : vector<8x16xf32>
    %c0_7 = arith.constant 0 : index
    %c0_8 = arith.constant 0 : index
    %c0_9 = arith.constant 0 : index
    %c3 = arith.constant 3 : index
    %13 = vector.load %arg2[%c0_7, %c0_8, %c0_9, %c3] : memref<1x2x4x20xbf16, #tpu.memory_space<vmem>>, vector<1x1x4x16xbf16>
    %14 = vector.shape_cast %13 : vector<1x1x4x16xbf16> to vector<4x16xbf16>
    %15 = vector.extract_strided_slice %5 {offsets = [1, 0, 0], sizes = [1, 8, 4], strides = [1, 1, 1]} : vector<5x8x4xbf16> to vector<1x8x4xbf16>
    %16 = vector.shape_cast %15 : vector<1x8x4xbf16> to vector<8x4xbf16>
    %cst_10 = arith.constant dense<0.000000e+00> : vector<8x16xf32>
    %17 = tpu.matmul %16, %14, %cst_10 {dimension_numbers = #tpu.dot_dimension_numbers<[1], [0], [0], [1], [0, 0, 1, 1], [], []>} : vector<8x4xbf16>, vector<4x16xbf16>, vector<8x16xf32> -> vector<8x16xf32>
    %18 = arith.addf %12, %17 : vector<8x16xf32>
    %c0_11 = arith.constant 0 : index
    %c0_12 = arith.constant 0 : index
    %c0_13 = arith.constant 0 : index
    %c2 = arith.constant 2 : index
    %19 = vector.load %arg2[%c0_11, %c0_12, %c0_13, %c2] : memref<1x2x4x20xbf16, #tpu.memory_space<vmem>>, vector<1x1x4x16xbf16>
    %20 = vector.shape_cast %19 : vector<1x1x4x16xbf16> to vector<4x16xbf16>
    %21 = vector.extract_strided_slice %5 {offsets = [2, 0, 0], sizes = [1, 8, 4], strides = [1, 1, 1]} : vector<5x8x4xbf16> to vector<1x8x4xbf16>
    %22 = vector.shape_cast %21 : vector<1x8x4xbf16> to vector<8x4xbf16>
    %cst_14 = arith.constant dense<0.000000e+00> : vector<8x16xf32>
    %23 = tpu.matmul %22, %20, %cst_14 {dimension_numbers = #tpu.dot_dimension_numbers<[1], [0], [0], [1], [0, 0, 1, 1], [], []>} : vector<8x4xbf16>, vector<4x16xbf16>, vector<8x16xf32> -> vector<8x16xf32>
    %24 = arith.addf %18, %23 : vector<8x16xf32>
    %c0_15 = arith.constant 0 : index
    %c0_16 = arith.constant 0 : index
    %c0_17 = arith.constant 0 : index
    %c1 = arith.constant 1 : index
    %25 = vector.load %arg2[%c0_15, %c0_16, %c0_17, %c1] : memref<1x2x4x20xbf16, #tpu.memory_space<vmem>>, vector<1x1x4x16xbf16>
    %26 = vector.shape_cast %25 : vector<1x1x4x16xbf16> to vector<4x16xbf16>
    %27 = vector.extract_strided_slice %5 {offsets = [3, 0, 0], sizes = [1, 8, 4], strides = [1, 1, 1]} : vector<5x8x4xbf16> to vector<1x8x4xbf16>
    %28 = vector.shape_cast %27 : vector<1x8x4xbf16> to vector<8x4xbf16>
    %cst_18 = arith.constant dense<0.000000e+00> : vector<8x16xf32>
    %29 = tpu.matmul %28, %26, %cst_18 {dimension_numbers = #tpu.dot_dimension_numbers<[1], [0], [0], [1], [0, 0, 1, 1], [], []>} : vector<8x4xbf16>, vector<4x16xbf16>, vector<8x16xf32> -> vector<8x16xf32>
    %30 = arith.addf %24, %29 : vector<8x16xf32>
    %c0_19 = arith.constant 0 : index
    %c0_20 = arith.constant 0 : index
    %c0_21 = arith.constant 0 : index
    %c0_22 = arith.constant 0 : index
    %31 = vector.load %arg2[%c0_19, %c0_20, %c0_21, %c0_22] : memref<1x2x4x20xbf16, #tpu.memory_space<vmem>>, vector<1x1x4x16xbf16>
    %32 = vector.shape_cast %31 : vector<1x1x4x16xbf16> to vector<4x16xbf16>
    %33 = vector.extract_strided_slice %5 {offsets = [4, 0, 0], sizes = [1, 8, 4], strides = [1, 1, 1]} : vector<5x8x4xbf16> to vector<1x8x4xbf16>
    %34 = vector.shape_cast %33 : vector<1x8x4xbf16> to vector<8x4xbf16>
    %cst_23 = arith.constant dense<0.000000e+00> : vector<8x16xf32>
    %35 = tpu.matmul %34, %32, %cst_23 {dimension_numbers = #tpu.dot_dimension_numbers<[1], [0], [0], [1], [0, 0, 1, 1], [], []>} : vector<8x4xbf16>, vector<4x16xbf16>, vector<8x16xf32> -> vector<8x16xf32>
    %36 = arith.addf %30, %35 : vector<8x16xf32>
    %c0_24 = arith.constant 0 : index
    %c0_25 = arith.constant 0 : index
    %c0_26 = arith.constant 0 : index
    %c0_27 = arith.constant 0 : index
    %37 = vector.load %arg4[%c0_24, %c0_25, %c0_26, %c0_27] : memref<1x2x8x16xf32, #tpu.memory_space<vmem>>, vector<1x1x8x16xf32>
    %38 = vector.shape_cast %37 : vector<1x1x8x16xf32> to vector<8x16xf32>
    %39 = arith.addf %38, %36 : vector<8x16xf32>
    %c0_28 = arith.constant 0 : index
    %c0_29 = arith.constant 0 : index
    %c0_30 = arith.constant 0 : index
    %c0_31 = arith.constant 0 : index
    %40 = vector.load %arg4[%c0_28, %c0_29, %c0_30, %c0_31] : memref<1x2x8x16xf32, #tpu.memory_space<vmem>>, vector<1x1x8x16xf32>
    %41 = vector.shape_cast %40 : vector<1x1x8x16xf32> to vector<8x16xf32>
    %42 = vector.shape_cast %39 : vector<8x16xf32> to vector<1x1x8x16xf32>
    tpu.vector_store %arg4[%c0_28, %c0_29, %c0_30, %c0_31], %42 {strides = array<i32>} : memref<1x2x8x16xf32, #tpu.memory_space<vmem>>, vector<1x1x8x16xf32>,
    %c0_32 = arith.constant 0 : index
    %c1_33 = arith.constant 1 : index
    %c0_34 = arith.constant 0 : index
    %c4_35 = arith.constant 4 : index
    %43 = vector.load %arg2[%c0_32, %c1_33, %c0_34, %c4_35] : memref<1x2x4x20xbf16, #tpu.memory_space<vmem>>, vector<1x1x4x16xbf16>
    %44 = vector.shape_cast %43 : vector<1x1x4x16xbf16> to vector<4x16xbf16>
    %45 = vector.extract_strided_slice %5 {offsets = [0, 0, 0], sizes = [1, 8, 4], strides = [1, 1, 1]} : vector<5x8x4xbf16> to vector<1x8x4xbf16>
    %46 = vector.shape_cast %45 : vector<1x8x4xbf16> to vector<8x4xbf16>
    %cst_36 = arith.constant dense<0.000000e+00> : vector<8x16xf32>
    %47 = tpu.matmul %46, %44, %cst_36 {dimension_numbers = #tpu.dot_dimension_numbers<[1], [0], [0], [1], [0, 0, 1, 1], [], []>} : vector<8x4xbf16>, vector<4x16xbf16>, vector<8x16xf32> -> vector<8x16xf32>
    %48 = arith.addf %6, %47 : vector<8x16xf32>
    %c0_37 = arith.constant 0 : index
    %c1_38 = arith.constant 1 : index
    %c0_39 = arith.constant 0 : index
    %c3_40 = arith.constant 3 : index
    %49 = vector.load %arg2[%c0_37, %c1_38, %c0_39, %c3_40] : memref<1x2x4x20xbf16, #tpu.memory_space<vmem>>, vector<1x1x4x16xbf16>
    %50 = vector.shape_cast %49 : vector<1x1x4x16xbf16> to vector<4x16xbf16>
    %51 = vector.extract_strided_slice %5 {offsets = [1, 0, 0], sizes = [1, 8, 4], strides = [1, 1, 1]} : vector<5x8x4xbf16> to vector<1x8x4xbf16>
    %52 = vector.shape_cast %51 : vector<1x8x4xbf16> to vector<8x4xbf16>
    %cst_41 = arith.constant dense<0.000000e+00> : vector<8x16xf32>
    %53 = tpu.matmul %52, %50, %cst_41 {dimension_numbers = #tpu.dot_dimension_numbers<[1], [0], [0], [1], [0, 0, 1, 1], [], []>} : vector<8x4xbf16>, vector<4x16xbf16>, vector<8x16xf32> -> vector<8x16xf32>
    %54 = arith.addf %48, %53 : vector<8x16xf32>
    %c0_42 = arith.constant 0 : index
    %c1_43 = arith.constant 1 : index
    %c0_44 = arith.constant 0 : index
    %c2_45 = arith.constant 2 : index
    %55 = vector.load %arg2[%c0_42, %c1_43, %c0_44, %c2_45] : memref<1x2x4x20xbf16, #tpu.memory_space<vmem>>, vector<1x1x4x16xbf16>
    %56 = vector.shape_cast %55 : vector<1x1x4x16xbf16> to vector<4x16xbf16>
    %57 = vector.extract_strided_slice %5 {offsets = [2, 0, 0], sizes = [1, 8, 4], strides = [1, 1, 1]} : vector<5x8x4xbf16> to vector<1x8x4xbf16>
    %58 = vector.shape_cast %57 : vector<1x8x4xbf16> to vector<8x4xbf16>
    %cst_46 = arith.constant dense<0.000000e+00> : vector<8x16xf32>
    %59 = tpu.matmul %58, %56, %cst_46 {dimension_numbers = #tpu.dot_dimension_numbers<[1], [0], [0], [1], [0, 0, 1, 1], [], []>} : vector<8x4xbf16>, vector<4x16xbf16>, vector<8x16xf32> -> vector<8x16xf32>
    %60 = arith.addf %54, %59 : vector<8x16xf32>
    %c0_47 = arith.constant 0 : index
    %c1_48 = arith.constant 1 : index
    %c0_49 = arith.constant 0 : index
    %c1_50 = arith.constant 1 : index
    %61 = vector.load %arg2[%c0_47, %c1_48, %c0_49, %c1_50] : memref<1x2x4x20xbf16, #tpu.memory_space<vmem>>, vector<1x1x4x16xbf16>
    %62 = vector.shape_cast %61 : vector<1x1x4x16xbf16> to vector<4x16xbf16>
    %63 = vector.extract_strided_slice %5 {offsets = [3, 0, 0], sizes = [1, 8, 4], strides = [1, 1, 1]} : vector<5x8x4xbf16> to vector<1x8x4xbf16>
    %64 = vector.shape_cast %63 : vector<1x8x4xbf16> to vector<8x4xbf16>
    %cst_51 = arith.constant dense<0.000000e+00> : vector<8x16xf32>
    %65 = tpu.matmul %64, %62, %cst_51 {dimension_numbers = #tpu.dot_dimension_numbers<[1], [0], [0], [1], [0, 0, 1, 1], [], []>} : vector<8x4xbf16>, vector<4x16xbf16>, vector<8x16xf32> -> vector<8x16xf32>
    %66 = arith.addf %60, %65 : vector<8x16xf32>
    %c0_52 = arith.constant 0 : index
    %c1_53 = arith.constant 1 : index
    %c0_54 = arith.constant 0 : index
    %c0_55 = arith.constant 0 : index
    %67 = vector.load %arg2[%c0_52, %c1_53, %c0_54, %c0_55] : memref<1x2x4x20xbf16, #tpu.memory_space<vmem>>, vector<1x1x4x16xbf16>
    %68 = vector.shape_cast %67 : vector<1x1x4x16xbf16> to vector<4x16xbf16>
    %69 = vector.extract_strided_slice %5 {offsets = [4, 0, 0], sizes = [1, 8, 4], strides = [1, 1, 1]} : vector<5x8x4xbf16> to vector<1x8x4xbf16>
    %70 = vector.shape_cast %69 : vector<1x8x4xbf16> to vector<8x4xbf16>
    %cst_56 = arith.constant dense<0.000000e+00> : vector<8x16xf32>
    %71 = tpu.matmul %70, %68, %cst_56 {dimension_numbers = #tpu.dot_dimension_numbers<[1], [0], [0], [1], [0, 0, 1, 1], [], []>} : vector<8x4xbf16>, vector<4x16xbf16>, vector<8x16xf32> -> vector<8x16xf32>
    %72 = arith.addf %66, %71 : vector<8x16xf32>
    %c0_57 = arith.constant 0 : index
    %c1_58 = arith.constant 1 : index
    %c0_59 = arith.constant 0 : index
    %c0_60 = arith.constant 0 : index
    %73 = vector.load %arg4[%c0_57, %c1_58, %c0_59, %c0_60] : memref<1x2x8x16xf32, #tpu.memory_space<vmem>>, vector<1x1x8x16xf32>
    %74 = vector.shape_cast %73 : vector<1x1x8x16xf32> to vector<8x16xf32>
    %75 = arith.addf %74, %72 : vector<8x16xf32>
    %c0_61 = arith.constant 0 : index
    %c1_62 = arith.constant 1 : index
    %c0_63 = arith.constant 0 : index
    %c0_64 = arith.constant 0 : index
    %76 = vector.load %arg4[%c0_61, %c1_62, %c0_63, %c0_64] : memref<1x2x8x16xf32, #tpu.memory_space<vmem>>, vector<1x1x8x16xf32>
    %77 = vector.shape_cast %76 : vector<1x1x8x16xf32> to vector<8x16xf32>
    %78 = vector.shape_cast %75 : vector<8x16xf32> to vector<1x1x8x16xf32>
    tpu.vector_store %arg4[%c0_61, %c1_62, %c0_63, %c0_64], %78 {strides = array<i32>} : memref<1x2x8x16xf32, #tpu.memory_space<vmem>>, vector<1x1x8x16xf32>,
    return
  }
  func.func @transform_0(%arg0: i32, %arg1: i32) -> (i32, i32, i32, i32) {
    %c2_i32 = arith.constant 2 : i32
    %0 = arith.addi %arg0, %c2_i32 : i32
    %c1_i32 = arith.constant 1 : i32
    %1 = arith.muli %arg1, %c1_i32 : i32
    %2 = arith.subi %0, %1 : i32
    %c0_i32 = arith.constant 0 : i32
    %c0_i32_0 = arith.constant 0 : i32
    %c0_i32_1 = arith.constant 0 : i32
    %c0_i32_2 = arith.constant 0 : i32
    return %2, %c0_i32, %c0_i32_0, %c0_i32_1 : i32, i32, i32, i32
  }
  func.func @transform_1(%arg0: i32, %arg1: i32) -> (i32, i32, i32, i32) {
    %c0_i32 = arith.constant 0 : i32
    %c0_i32_0 = arith.constant 0 : i32
    %c0_i32_1 = arith.constant 0 : i32
    %c0_i32_2 = arith.constant 0 : i32
    %c0_i32_3 = arith.constant 0 : i32
    return %c0_i32, %c0_i32_0, %c0_i32_1, %c0_i32_2 : i32, i32, i32, i32
  }
  func.func @transform_2(%arg0: i32, %arg1: i32) -> (i32, i32, i32, i32) {
    %c0_i32 = arith.constant 0 : i32
    %c0_i32_0 = arith.constant 0 : i32
    %c0_i32_1 = arith.constant 0 : i32
    %c0_i32_2 = arith.constant 0 : i32
    return %arg0, %c0_i32, %c0_i32_0, %c0_i32_1 : i32, i32, i32, i32
  }
}

</mosaic_0001>

<bundles_post_ra>
// kernel: conv_transpose2d_pallas.1
= control target key start
LH: loop header
LB: loop body
LE: loop exit
PB: predicated region body
PF: predicated region fallthrough
CT: control target
= control target key end

     0   :  { %s1015_s9 = smov 0   ;;  %s1017_s10 = smov 0   ;;  %s1147_s0 = inlined_call_operand.vmem [shape: bf16[12,2,4,20], index: 0, kind: input, shape index: {}]   ;;  %s1148_s1 = inlined_call_operand.vmem [shape: bf16[3,5,8,4], index: 1, kind: input, shape index: {}]   ;;  %s1149_s2 = inlined_call_operand.vmem [shape: f32[10,2,8,16], index: 2, kind: output, shape index: {}]  }
   0x1   :  { %s1019_s11 = smov 0   ;;  %s1021_s12 = smov 0  }
   0x2   :  { %s1023_s13 = smov 0  }
   0x3 LB: > { %s21_s14 = sadd.s32 1, %s983_s11  ;;  %s24_s15 = sadd.s32 1, %s987_s12  ;;  %s991_s13 = sphi %s1023_s13, %s12_s13   ;;  %s987_s12 = sphi %s1021_s12, %s1153_s12   ;;  %s983_s11 = sphi %s1019_s11, %s1152_s11   ;;  %s979_s10 = sphi %s1017_s10, %s1151_s10   ;;  %s975_s9 = sphi %s1015_s9, %s1150_s9  }
   0x4   : > { %p22_p0 = scmp.ge.s32.totalorder %s21_s14, 3  ;;  %p792_p1 = scmp.ge.s32.totalorder %s991_s13, 1 }
   0x5   : > { %p132_p2 = scmp.lt.s32.totalorder %s991_s13, 31 }
   0x6   : > { %s1155_s14 = smov (%p22_p0, %s21_s14), 0  ;;  %s1157_s15 = smov (!%p22_p0, %s24_s15), %s987_s12 }
   0x7   : > { %p133_p3 = pnand %p792_p1, %p132_p2  ;;  %p26_p4 = scmp.ge.s32.totalorder %s1157_s15, 10 }
   0x8   : > { %s156_s16 = sadd.s32 (!%p133_p3), 2, %s979_s10  ;;  %p165_p5 = scmp.lt.s32.totalorder (!%p133_p3), %s979_s10, 9 }
   0x9   : > { %s1159_s15 = smov (%p26_p4, %s1157_s15), 0  ;;  %136 = sbr.rel (%p133_p3) target bundleno = 399 (0x18f), region = 28 }
   0xa   : > { %s157_s17 = ssub.s32 (!%p133_p3), %s156_s16, %s975_s9  ;;  %p797_p7 = scmp.ne.s32.totalorder (!%p133_p3), %s975_s9, 0 }
   0xb   : > { %p158_p6 = scmp.lt.s32.totalorder (!%p133_p3), %s157_s17, 11 }
  0x10   : > { %s1161_s10 = smov (!%p165_p5, %s979_s10), 9  ;;  %s1163_s17 = smov (!%p158_p6, %s157_s17), 11 }
  0x11   : > { %s824_s18 = sshll.u32 %s1161_s10, 4  ;;  %s823_s19 = sshll.u32 %s1163_s17, 2  ;;  %vm175_vm0 = vcmask (!%p797_p7), 130048   ;;  %v993_v0 = vmov (!%p797_p7), 0.0  }
  0x12   : > { %s1051_s22 = scalar_lea.vmem %s1149_s2, %s824_s18  ;;  %s1056_s25 = scalar_lea.vmem %s1147_s0, %s823_s19 }
  0x13   : > { %174 = sbr.rel (%p797_p7) target bundleno = 26 (0x1a), region = 32  ;;  %176 = vst.msk [vmem:[%s1051_s22] sm:$0xff] (!%p797_p7), %vm175_vm0, %v993_v0  ;;  %177 = vst.msk [vmem:[%s1051_s22 + $0x8] sm:$0xff] (!%p797_p7), %vm175_vm0, %v993_v0 }
  0x1a PF: > { %v799_v1 = vld.sshfl [vmem:[%s1056_s25] sm:$0x3 pattern:$0x76325410]  ;;  %s994_s26 = smov 125   ;;  %s995_s27 = smov 126  }
  0x1b   : > { %195 = vrot.lane.b32.xlu0 %v799_v1, %s994_s26  ;;  %302 = vrot.lane.b32.xlu1 %v799_v1, %s995_s27  ;;  %v996_v2 = vmov 0.0   ;;  %vm997_vm1 = vmmov 0   ;;  %s998_s28 = smov 124   ;;  %s999_s29 = smov 127   ;;  %vm201_vm2 = vcmask 1041408   ;;  %vm197_vm3 = vcmask 31744  }
  0x1c   : > { %846 = vmatprep.subr.bf16.mxu0 %v996_v2  ;;  %848 = vmatprep.mubr.msk.bf16.mxu0 %vm997_vm1, %v996_v2  ;;  %v808_v3 = vld.sshfl [vmem:[%s1056_s25 + $0x2] sm:$0x3 pattern:$0x76325410]  ;;  %s825_s30 = smul.u32 20, %s975_s9  ;;  %vm459_vm4 = vcmask 130048  }
  0x1d   : > { %852 = vmatprep.subr.bf16.mxu1 %v996_v2  ;;  %854 = vmatprep.mubr.msk.bf16.mxu1 %vm997_vm1, %v996_v2  ;;  %v409_v14 = vld [vmem:[%s1056_s25] sm:$0x3]  ;;  %v817_v27 = vld [vmem:[%s1056_s25 + $0x2] sm:$0x3] }
  0x1e   : > { %s1073_s5 = scalar_lea.vmem %s1148_s1, %s825_s30  ;;  %v414_v16 = vsel %vm201_vm2, %v409_v14, 0  ;;  %v673_v28 = vsel %vm201_vm2, %v817_v27, 0  ;;  %v457_v49 = vld [vmem:[%s1051_s22] sm:$0xff] }
  0x1f   : > { %245 = vrot.lane.b32.xlu0 %v799_v1, %s998_s28  ;;  %360 = vrot.lane.b32.xlu1 %v799_v1, %s999_s29  ;;  %v182_v7 = vld [vmem:[%s1073_s5 + $0x4] sm:$0xf]  ;;  %v181_v12 = vld [vmem:[%s1073_s5] sm:$0xf] }
  0x20   : > { %v183_v15 = vld [vmem:[%s1073_s5 + $0x8] sm:$0xf]  ;;  %v184_v18 = vld [vmem:[%s1073_s5 + $0xc] sm:$0xf]  ;;  %v185_v21 = vld [vmem:[%s1073_s5 + $0x10] sm:$0xf] }
  0x23   : > { %471 = vrot.lane.b32.xlu0 %v808_v3, %s994_s26  ;;  %516 = vrot.lane.b32.xlu1 %v808_v3, %s998_s28 }
  0x27   : > { %570 = vrot.lane.b32.xlu0 %v808_v3, %s995_s27  ;;  %625 = vrot.lane.b32.xlu1 %v808_v3, %s999_s29 }
  0x8d   : > { %v196_v4 = vpop.permute.xlu0 %195  ;;  %v303_v5 = vpop.permute.xlu1 %302 }
  0x8e   : > { %v203_v6 = vsel %vm201_vm2, %v196_v4, 0  ;;  %v308_v8 = vsel %vm201_vm2, %v303_v5, 0 }
  0x8f   : > { %847 = vmatpush3.bf16.msra.mxu0 %v203_v6 }
  0x90   : > { %858 = vmatprep.subr.bf16.mxu0 %v996_v2 }
  0x91   : > { %v246_v9 = vpop.permute.xlu0 %245  ;;  %v361_v10 = vpop.permute.xlu1 %360 }
  0x92   : > { %849 = vmatmul.mubr.msk.bf16.vlgmr.msra.gmra.mrb[0].mxu0 %vm197_vm3, %v182_v7  ;;  %v251_v11 = vsel %vm201_vm2, %v246_v9, 0  ;;  %v366_v13 = vsel %vm201_vm2, %v361_v10, 0 }
  0x93   : > { %853 = vmatpush3.bf16.msra.mxu1 %v251_v11  ;;  %859 = vmatpush3.bf16.msra.mxu0 %v308_v8  ;;  %v819_v11 = vld [vmem:[%s1051_s22 + $0x8] sm:$0xff] }
  0x94   : > { %864 = vmatprep.subr.bf16.mxu1 %v996_v2  ;;  %860 = vmatprep.mubr.msk.bf16.mxu0 %vm997_vm1, %v996_v2 }
  0x95   : > { %870 = vmatprep.subr.bf16.mxu0 %v996_v2  ;;  %v472_v17 = vpop.permute.xlu0 %471  ;;  %v517_v20 = vpop.permute.xlu1 %516 }
  0x96   : > { %855 = vmatmul.mubr.msk.bf16.vlgmr.msra.gmra.mrb[0].mxu1 %vm197_vm3, %v181_v12  ;;  %v474_v19 = vsel %vm201_vm2, %v472_v17, 0  ;;  %v519_v22 = vsel %vm201_vm2, %v517_v20, 0 }
  0x97   : > { %865 = vmatpush3.bf16.msra.mxu1 %v366_v13  ;;  %866 = vmatprep.mubr.msk.bf16.mxu1 %vm997_vm1, %v996_v2 }
  0x98   : > { %876 = vmatprep.subr.bf16.mxu1 %v996_v2 }
  0x99   : > { %v571_v23 = vpop.permute.xlu0 %570  ;;  %v626_v25 = vpop.permute.xlu1 %625 }
  0x9a   : > { %861 = vmatmul.mubr.msk.bf16.vlgmr.msra.gmra.mrb[4].mxu0 %vm197_vm3, %v183_v15  ;;  %v573_v24 = vsel %vm201_vm2, %v571_v23, 0  ;;  %v628_v26 = vsel %vm201_vm2, %v626_v25, 0 }
  0x9b   : > { %871 = vmatpush3.bf16.msra.mxu0 %v414_v16  ;;  %872 = vmatprep.mubr.msk.bf16.mxu0 %vm997_vm1, %v996_v2 }
  0x9c   : > { %882 = vmatprep.subr.bf16.mxu0 %v996_v2 }
  0x9e   : > { %867 = vmatmul.mubr.msk.bf16.vlgmr.msra.gmra.mrb[4].mxu1 %vm197_vm3, %v184_v18 }
  0x9f   : > { %877 = vmatpush3.bf16.msra.mxu1 %v474_v19  ;;  %878 = vmatprep.mubr.msk.bf16.mxu1 %vm997_vm1, %v996_v2 }
  0xa0   : > { %888 = vmatprep.subr.bf16.mxu1 %v996_v2 }
  0xa2   : > { %873 = vmatmul.mubr.msk.bf16.vlgmr.msra.gmra.mrb[8].mxu0 %vm197_vm3, %v185_v21 }
  0xa3   : > { %883 = vmatpush3.bf16.msra.mxu0 %v519_v22  ;;  %884 = vmatprep.mubr.msk.bf16.mxu0 %vm997_vm1, %v996_v2 }
  0xa4   : > { %894 = vmatprep.subr.bf16.mxu0 %v996_v2 }
  0xa6   : > { %879 = vmatmul.mubr.msk.bf16.vlgmr.msra.gmra.mrb[8].mxu1 %vm197_vm3, %v182_v7 }
  0xa7   : > { %889 = vmatpush3.bf16.msra.mxu1 %v573_v24  ;;  %890 = vmatprep.mubr.msk.bf16.mxu1 %vm997_vm1, %v996_v2 }
  0xa8   : > { %900 = vmatprep.subr.bf16.mxu1 %v996_v2 }
  0xaa   : > { %885 = vmatmul.mubr.msk.bf16.vlgmr.msra.gmra.mrb[12].mxu0 %vm197_vm3, %v181_v12 }
  0xab   : > { %895 = vmatpush3.bf16.msra.mxu0 %v628_v26  ;;  %896 = vmatprep.mubr.msk.bf16.mxu0 %vm997_vm1, %v996_v2 }
  0xae   : > { %891 = vmatmul.mubr.msk.bf16.vlgmr.msra.gmra.mrb[12].mxu1 %vm197_vm3, %v183_v15 }
  0xaf   : > { %901 = vmatpush3.bf16.msra.mxu1 %v673_v28  ;;  %902 = vmatprep.mubr.msk.bf16.mxu1 %vm997_vm1, %v996_v2 }
  0xb2   : > { %897 = vmatmul.mubr.msk.bf16.vlgmr.msra.gmra.mrb[16].mxu0 %vm197_vm3, %v184_v18 }
  0xb6   : > { %903 = vmatmul.mubr.msk.bf16.vlgmr.msra.gmra.mrb[16].mxu1 %vm197_vm3, %v185_v21 }
 0x165   : > { %v239_v29 = vpop.f32.mrb[0].mxu0 }
 0x166   : > { %v850_v30 = vpop.f32.mrb[1].mxu0 }
 0x167   : > { %v242_v31 = vpop.f32.mrb[2].mxu0 }
 0x168   : > { %v851_v32 = vpop.f32.mrb[3].mxu0 }
 0x169   : > { %v287_v33 = vpop.f32.mrb[0].mxu1 }
 0x16a   : > { %v288_v34 = vadd.f32 %v287_v33, %v239_v29  ;;  %v856_v35 = vpop.f32.mrb[1].mxu1 }
 0x16b   : > { %v290_v36 = vpop.f32.mrb[2].mxu1 }
 0x16c   : > { %v857_v37 = vpop.f32.mrb[3].mxu1 }
 0x16d   : > { %v344_v38 = vpop.f32.mrb[4].mxu0 }
 0x16e   : > { %v350_v39 = vadd.f32 %v344_v38, %v288_v34  ;;  %v862_v40 = vpop.f32.mrb[5].mxu0 }
 0x16f   : > { %v347_v41 = vpop.f32.mrb[6].mxu0 }
 0x170   : > { %v863_v42 = vpop.f32.mrb[7].mxu0 }
 0x171   : > { %v402_v43 = vpop.f32.mrb[4].mxu1 }
 0x172   : > { %v408_v44 = vadd.f32 %v402_v43, %v350_v39  ;;  %v868_v45 = vpop.f32.mrb[5].mxu1 }
 0x173   : > { %v405_v46 = vpop.f32.mrb[6].mxu1 }
 0x174   : > { %v869_v47 = vpop.f32.mrb[7].mxu1 }
 0x175   : > { %v450_v48 = vpop.f32.mrb[8].mxu0 }
 0x176   : > { %v456_v50 = vadd.f32 %v450_v48, %v408_v44  ;;  %v874_v51 = vpop.f32.mrb[9].mxu0 }
 0x177   : > { %v453_v52 = vpop.f32.mrb[10].mxu0 }
 0x178   : > { %v458_v53 = vadd.f32 %v457_v49, %v456_v50  ;;  %v875_v54 = vpop.f32.mrb[11].mxu0 }
 0x179   : > { %v510_v55 = vpop.f32.mrb[8].mxu1 }
 0x17a   : > { %460 = vst.msk [vmem:[%s1051_s22] sm:$0xff] %vm459_vm4, %v458_v53  ;;  %v880_v56 = vpop.f32.mrb[9].mxu1 }
 0x17b   : > { %v513_v57 = vpop.f32.mrb[10].mxu1 }
 0x17c   : > { %v881_v58 = vpop.f32.mrb[11].mxu1 }
 0x17d   : > { %v555_v59 = vpop.f32.mrb[12].mxu0 }
 0x17e   : > { %v556_v60 = vadd.f32 %v555_v59, %v510_v55  ;;  %v886_v61 = vpop.f32.mrb[13].mxu0 }
 0x17f   : > { %v558_v62 = vpop.f32.mrb[14].mxu0 }
 0x180   : > { %v887_v63 = vpop.f32.mrb[15].mxu0 }
 0x181   : > { %v609_v0 = vpop.f32.mrb[12].mxu1 }
 0x182   : > { %v615_v1 = vadd.f32 %v609_v0, %v556_v60  ;;  %v892_v2 = vpop.f32.mrb[13].mxu1 }
 0x183   : > { %v612_v3 = vpop.f32.mrb[14].mxu1 }
 0x184   : > { %v893_v4 = vpop.f32.mrb[15].mxu1 }
 0x185   : > { %v664_v5 = vpop.f32.mrb[16].mxu0 }
 0x186   : > { %v670_v6 = vadd.f32 %v664_v5, %v615_v1  ;;  %v898_v7 = vpop.f32.mrb[17].mxu0 }
 0x187   : > { %v667_v8 = vpop.f32.mrb[18].mxu0 }
 0x188   : > { %v899_v9 = vpop.f32.mrb[19].mxu0 }
 0x189   : > { %v709_v10 = vpop.f32.mrb[16].mxu1 }
 0x18a   : > { %v715_v12 = vadd.f32 %v709_v10, %v670_v6  ;;  %v904_v13 = vpop.f32.mrb[17].mxu1 }
 0x18b   : > { %v712_v14 = vpop.f32.mrb[18].mxu1 }
 0x18c   : > { %v718_v15 = vadd.f32 %v819_v11, %v715_v12  ;;  %v905_v16 = vpop.f32.mrb[19].mxu1 }
 0x18e   : > { %820 = vst.msk [vmem:[%s1051_s22 + $0x8] sm:$0xff] %vm459_vm4, %v718_v15 }
 0x18f PF: > { %s12_s13 = sadd.s32 1, %s991_s13   ;;  %s1150_s9 = smov %s983_s11 }
 0x190   : > { %p9_p8 = scmp.ge.s32.totalorder %s12_s13, 32   ;;  %s1151_s10 = smov %s987_s12 }
 0x191   : > { %s1152_s11 = smov %s1155_s14  ;;  %s1153_s12 = smov %s1159_s15 }
 0x192   :  { %11 = sbr.rel (!%p9_p8) target bundleno = 3 (0x3), region = 65 }

</bundles_post_ra>
